<compile_context>
chip_gen: v7x
topology: tpu7x:2x2x1
jax: 0.10.0
libtpu: 0.0.40
codegen_flags: <defaults>
</compile_context>

<pallas_src>
import functools

import jax
import jax.numpy as jnp
from jax.experimental import pallas as pl
from jax.experimental.pallas import tpu as pltpu


def _round_up(x, m):
    return (x + m - 1) // m * m


def _lin_classifier_kernel(conv_ref, idt_ref, wc_ref, wi_ref, b_ref, o_ref):
    # conv_ref: (tm, Dc) activations
    # idt_ref : (tm, Di) activations
    # wc_ref  : (Dc, Cp) transposed, class-padded fc weight half (resident)
    # wi_ref  : (Di, Cp) transposed, class-padded fc weight half (resident)
    # b_ref   : (1, Cp)  f32 class-padded bias (resident)
    # o_ref   : (tm, Cp)
    wdt = wc_ref.dtype
    acc = jnp.dot(conv_ref[...].astype(wdt), wc_ref[...],
                  preferred_element_type=jnp.float32)
    acc = acc + jnp.dot(idt_ref[...].astype(wdt), wi_ref[...],
                        preferred_element_type=jnp.float32)
    acc = acc + b_ref[...].astype(jnp.float32)
    o_ref[...] = acc.astype(o_ref.dtype)


def prepare_lin_classifier_params(weight, bias, dc, param_dtype=jnp.bfloat16):
    """One-time parameter prep (hoisted off the per-call hot path).

    weight: (num_classes, 1024)  PyTorch nn.Linear convention
    bias:   (num_classes,)
    dc:     number of `conv` features (idt gets the remaining 1024 - dc)

    Returns (w_conv, w_idt, b_p):
      w_conv: (dc, Cp)      param_dtype, W[:, :dc].T zero-padded to Cp classes
      w_idt : (1024-dc, Cp) param_dtype, W[:, dc:].T zero-padded to Cp classes
      b_p   : (1, Cp)       float32 zero-padded bias
    where Cp = ceil(num_classes / 128) * 128 (lane-dense output).
    """
    C, Dk = weight.shape
    di = Dk - dc
    Cp = _round_up(C, 128)
    w_conv = jnp.zeros((dc, Cp), param_dtype).at[:, :C].set(
        weight[:, :dc].T.astype(param_dtype))
    w_idt = jnp.zeros((di, Cp), param_dtype).at[:, :C].set(
        weight[:, dc:].T.astype(param_dtype))
    b_p = jnp.zeros((1, Cp), jnp.float32).at[0, :C].set(
        bias.astype(jnp.float32))
    return w_conv, w_idt, b_p


@functools.partial(
    jax.jit, static_argnames=("num_classes", "return_padded", "out_dtype"))
def lin_classifier_forward(conv, idt, w_conv, w_idt, b_p, *, num_classes,
                           return_padded=False, out_dtype=jnp.float32):
    """conv: (B, Dc), idt: (B, Di), Dc + Di == 1024.

    w_conv / w_idt / b_p come from prepare_lin_classifier_params.
    Returns (B, num_classes) logits in `out_dtype`, or the padded (B, Cp)
    block if return_padded=True (lets callers fuse the un-pad downstream).
    """
    B, Dc = conv.shape
    _, Di = idt.shape
    assert w_conv.shape[0] == Dc and w_idt.shape[0] == Di
    Cp = w_conv.shape[1]
    assert b_p.shape == (1, Cp)

    # Batch tiling: one block for B <= 1024 (block == full dim is always
    # legal), else 1024-row tiles.  1024 keeps the mem-bound pipeline near the
    # HBM roofline on every generation and the double-buffered footprint
    # (~9.5 MiB f32) under v5e's 16 MiB default scoped VMEM; v6e/v7x could go
    # to 2048 but gain little and would need vmem_limit_bytes on v5e.
    tile_m = B if B <= 1024 else 1024
    grid = (pl.cdiv(B, tile_m),)

    itemsize = lambda a: a.size * a.dtype.itemsize
    cost = pl.CostEstimate(
        flops=2 * B * (Dc + Di) * Cp,
        transcendentals=0,
        bytes_accessed=(itemsize(conv) + itemsize(idt) + itemsize(w_conv)
                        + itemsize(w_idt) + itemsize(b_p)
                        + B * Cp * jnp.dtype(out_dtype).itemsize),
    )

    out = pl.pallas_call(
        _lin_classifier_kernel,
        out_shape=jax.ShapeDtypeStruct((B, Cp), out_dtype),
        grid_spec=pltpu.PrefetchScalarGridSpec(
            num_scalar_prefetch=0,
            grid=grid,
            in_specs=[
                pl.BlockSpec((tile_m, Dc), lambda i: (i, 0)),
                pl.BlockSpec((tile_m, Di), lambda i: (i, 0)),
                pl.BlockSpec((Dc, Cp), lambda i: (0, 0)),   # resident weight
                pl.BlockSpec((Di, Cp), lambda i: (0, 0)),   # resident weight
                pl.BlockSpec((1, Cp), lambda i: (0, 0)),    # resident bias
            ],
            out_specs=pl.BlockSpec((tile_m, Cp), lambda i: (i, 0)),
        ),
        compiler_params=pltpu.CompilerParams(
            dimension_semantics=("parallel",)),
        cost_estimate=cost,
    )(conv, idt, w_conv, w_idt, b_p)

    if return_padded or Cp == num_classes:
        return out
    return out[:, :num_classes]


if __name__ == "__main__":
    key = jax.random.PRNGKey(0)
    k_conv, k_idt, k_w, k_b = jax.random.split(key, 4)

    B = 2
    Dc = 512          # conv feature half
    Di = 512          # idt feature half (Dc + Di = 1024, the fc in_features)
    num_classes = 8

    conv = jax.random.normal(k_conv, (B, Dc), dtype=jnp.float32)
    idt = jax.random.normal(k_idt, (B, Di), dtype=jnp.float32)

    # Deterministic synthetic fc parameters (nn.Linear(1024, num_classes)).
    bound = 1.0 / jnp.sqrt(1024.0)
    weight = jax.random.uniform(k_w, (num_classes, 1024), jnp.float32,
                                -bound, bound)
    bias = jax.random.uniform(k_b, (num_classes,), jnp.float32, -bound, bound)

    # One-time param prep (off the hot path), then the jitted kernel call.
    w_conv_p, w_idt_p, b_p = prepare_lin_classifier_params(weight, bias, Dc)
    out = lin_classifier_forward(conv, idt, w_conv_p, w_idt_p, b_p,
                                 num_classes=num_classes)
    out = jax.block_until_ready(out)
    assert out.shape == (B, num_classes)
    assert out.dtype == jnp.float32

    # Tight check against a reference using the same bf16 weights/activations
    # (f32 accumulation), i.e. what the kernel actually computes.
    x = jnp.concatenate([conv, idt], axis=1)
    ref_bf16 = jnp.dot(x.astype(jnp.bfloat16), weight.T.astype(jnp.bfloat16),
                       preferred_element_type=jnp.float32) + bias
    assert jnp.allclose(out, ref_bf16, atol=2e-3, rtol=2e-3)

    # Loose check against full-f32 PyTorch semantics (bf16 rounding only).
    ref_f32 = x @ weight.T + bias
    assert jnp.allclose(out, ref_f32, atol=5e-2, rtol=5e-2)

    print("KERNEL_OK")
</pallas_src>

<mosaic_0001>
module attributes {stable_mosaic.version = 11 : i64} {
  func.func @_lin_classifier_kernel(%arg0: i32, %arg1: memref<2x512xf32, #tpu.memory_space<vmem>>, %arg2: memref<2x512xf32, #tpu.memory_space<vmem>>, %arg3: memref<512x128xbf16, #tpu.memory_space<vmem>>, %arg4: memref<512x128xbf16, #tpu.memory_space<vmem>>, %arg5: memref<1x128xf32, #tpu.memory_space<vmem>>, %arg6: memref<2x128xf32, #tpu.memory_space<vmem>>) attributes {dimension_semantics = [#tpu.dimension_semantics<parallel>], iteration_bounds = array<i64: 1>, scalar_prefetch = 0 : i64, scratch_operands = 0 : i64, tpu.core_type = #tpu.core_type<tc>, window_params = [{transform_indices = @transform_0, window_bounds = array<i64: 2, 512>}, {transform_indices = @transform_1, window_bounds = array<i64: 2, 512>}, {pipeline_mode = #tpu.pipeline_mode<synchronous>, transform_indices = @transform_2, window_bounds = array<i64: 512, 128>}, {pipeline_mode = #tpu.pipeline_mode<synchronous>, transform_indices = @transform_3, window_bounds = array<i64: 512, 128>}, {pipeline_mode = #tpu.pipeline_mode<synchronous>, transform_indices = @transform_4, window_bounds = array<i64: 1, 128>}, {transform_indices = @transform_5, window_bounds = array<i64: 2, 128>}]} {
    %c0 = arith.constant 0 : index
    %c0_0 = arith.constant 0 : index
    %0 = vector.load %arg1[%c0, %c0_0] : memref<2x512xf32, #tpu.memory_space<vmem>>, vector<2x512xf32>
    %1 = arith.truncf %0 : vector<2x512xf32> to vector<2x512xbf16>
    %c0_1 = arith.constant 0 : index
    %c0_2 = arith.constant 0 : index
    %2 = vector.load %arg3[%c0_1, %c0_2] : memref<512x128xbf16, #tpu.memory_space<vmem>>, vector<512x128xbf16>
    %cst = arith.constant dense<0.000000e+00> : vector<2x128xf32>
    %3 = tpu.matmul %1, %2, %cst {dimension_numbers = #tpu.dot_dimension_numbers<[1], [0], [0], [1], [0, 0, 1, 1], [], []>} : vector<2x512xbf16>, vector<512x128xbf16>, vector<2x128xf32> -> vector<2x128xf32>
    %c0_3 = arith.constant 0 : index
    %c0_4 = arith.constant 0 : index
    %4 = vector.load %arg2[%c0_3, %c0_4] : memref<2x512xf32, #tpu.memory_space<vmem>>, vector<2x512xf32>
    %5 = arith.truncf %4 : vector<2x512xf32> to vector<2x512xbf16>
    %c0_5 = arith.constant 0 : index
    %c0_6 = arith.constant 0 : index
    %6 = vector.load %arg4[%c0_5, %c0_6] : memref<512x128xbf16, #tpu.memory_space<vmem>>, vector<512x128xbf16>
    %cst_7 = arith.constant dense<0.000000e+00> : vector<2x128xf32>
    %7 = tpu.matmul %5, %6, %cst_7 {dimension_numbers = #tpu.dot_dimension_numbers<[1], [0], [0], [1], [0, 0, 1, 1], [], []>} : vector<2x512xbf16>, vector<512x128xbf16>, vector<2x128xf32> -> vector<2x128xf32>
    %8 = arith.addf %3, %7 : vector<2x128xf32>
    %c0_8 = arith.constant 0 : index
    %c0_9 = arith.constant 0 : index
    %9 = vector.load %arg5[%c0_8, %c0_9] : memref<1x128xf32, #tpu.memory_space<vmem>>, vector<1x128xf32>
    %10 = vector.broadcast %9 : vector<1x128xf32> to vector<2x128xf32>
    %11 = arith.addf %8, %10 : vector<2x128xf32>
    %c0_10 = arith.constant 0 : index
    %c0_11 = arith.constant 0 : index
    %12 = vector.load %arg6[%c0_10, %c0_11] : memref<2x128xf32, #tpu.memory_space<vmem>>, vector<2x128xf32>
    tpu.vector_store %arg6[%c0_10, %c0_11], %11 {strides = array<i32>} : memref<2x128xf32, #tpu.memory_space<vmem>>, vector<2x128xf32>,
    return
  }
  func.func @transform_0(%arg0: i32) -> (i32, i32) {
    %c0_i32 = arith.constant 0 : i32
    %c0_i32_0 = arith.constant 0 : i32
    return %arg0, %c0_i32 : i32, i32
  }
  func.func @transform_1(%arg0: i32) -> (i32, i32) {
    %c0_i32 = arith.constant 0 : i32
    %c0_i32_0 = arith.constant 0 : i32
    return %arg0, %c0_i32 : i32, i32
  }
  func.func @transform_2(%arg0: i32) -> (i32, i32) {
    %c0_i32 = arith.constant 0 : i32
    %c0_i32_0 = arith.constant 0 : i32
    %c0_i32_1 = arith.constant 0 : i32
    return %c0_i32, %c0_i32_0 : i32, i32
  }
  func.func @transform_3(%arg0: i32) -> (i32, i32) {
    %c0_i32 = arith.constant 0 : i32
    %c0_i32_0 = arith.constant 0 : i32
    %c0_i32_1 = arith.constant 0 : i32
    return %c0_i32, %c0_i32_0 : i32, i32
  }
  func.func @transform_4(%arg0: i32) -> (i32, i32) {
    %c0_i32 = arith.constant 0 : i32
    %c0_i32_0 = arith.constant 0 : i32
    %c0_i32_1 = arith.constant 0 : i32
    return %c0_i32, %c0_i32_0 : i32, i32
  }
  func.func @transform_5(%arg0: i32) -> (i32, i32) {
    %c0_i32 = arith.constant 0 : i32
    %c0_i32_0 = arith.constant 0 : i32
    return %arg0, %c0_i32 : i32, i32
  }
}

</mosaic_0001>

<bundles_post_ra>
// kernel: lin_classifier_forward.1
= control target key start
LH: loop header
LB: loop body
LE: loop exit
PB: predicated region body
PF: predicated region fallthrough
CT: control target
= control target key end

     0   :  { %10 = vsyncpa [#allocation3], 0  ;;  %s1277_s0 = inlined_call_operand.hbm [shape: f32[2,512], index: 0, kind: input, shape index: {}]   ;;  %s1278_s1 = inlined_call_operand.hbm [shape: f32[2,512], index: 1, kind: input, shape index: {}]   ;;  %s1279_s2 = inlined_call_operand.hbm [shape: bf16[512,128], index: 2, kind: input, shape index: {}]   ;;  %s1280_s3 = inlined_call_operand.hbm [shape: bf16[512,128], index: 3, kind: input, shape index: {}]   ;;  %s1281_s4 = inlined_call_operand.vmem [shape: f32[1,128], index: 4, kind: input, shape index: {}]   ;;  %s1282_s5 = inlined_call_operand.hbm [shape: f32[2,128], index: 5, kind: output, shape index: {}]  }
   0x1   :  { %11 = vsyncpa [#allocation6], 0 }
   0x2   :  { %12 = vsyncpa [#allocation9], 0 }
   0x3   :  { %13 = vsyncpa [#allocation4], 0  ;;  %s1170_s18 = smov [#allocation5]   ;;  %s1171_s20 = smov [#allocation2]  }
   0x4   :  { %s30_s19 = sshll.u32 %s1170_s18, 4  ;;  %s20_s21 = sshll.u32 %s1171_s20, 4  ;;  %s31_s19 = int_to_ptr.vmem [resolvable:$true] %s30_s19  ;;  %s21_s21 = int_to_ptr.vmem [resolvable:$true] %s20_s21 }
   0x5   :  { %s1052_s24 = scalar_lea.hbm %s1278_s1, 128 }
   0x6   :  { %p1053_p0 = scmp.ne.s32.totalorder %s1278_s1, %s1052_s24  ;;  %p1056_p1 = scmp.lt.u32.totalorder %s1052_s24, %s1278_s1 }
   0x8   :  { %p1058_p2 = pnand %p1056_p1, %p1053_p0 }
   0xa   :  { %1061 = shalt.err (!%p1058_p2)
}
   0xb   :  { %s1062_s29 = scalar_lea.vmem %s31_s19, 128  ;;  %p1067_p4 = scmp.lt.s32.totalorder %s31_s19, %s31_s19 }
   0xc   :  { %p1063_p3 = scmp.ne.s32.totalorder %s31_s19, %s1062_s29  ;;  %p1068_p5 = scmp.lt.s32.totalorder %s1062_s29, %s1062_s29 }
   0xe   :  { %p1069_p6 = por %p1068_p5, %p1067_p4 }
  0x10   :  { %p1070_p7 = pnand %p1069_p6, %p1063_p3 }
  0x12   :  { %1073 = shalt.err (!%p1070_p7)
}
  0x13   :  { %33 = dma.hbm_to_vmem [thread:$0]  %s1278_s1, 128, %s31_s19, [#allocation6]  }
  0x14   :  { %s1074_s9 = scalar_lea.hbm %s1277_s0, 128 }
  0x15   :  { %p1075_p8 = scmp.ne.s32.totalorder %s1277_s0, %s1074_s9  ;;  %p1078_p9 = scmp.lt.u32.totalorder %s1074_s9, %s1277_s0 }
  0x17   :  { %p1080_p10 = pnand %p1078_p9, %p1075_p8 }
  0x19   :  { %1083 = shalt.err (!%p1080_p10)
}
  0x1a   :  { %s1084_s14 = scalar_lea.vmem %s21_s21, 128  ;;  %p1089_p12 = scmp.lt.s32.totalorder %s21_s21, %s21_s21 }
  0x1b   :  { %p1085_p11 = scmp.ne.s32.totalorder %s21_s21, %s1084_s14  ;;  %p1090_p13 = scmp.lt.s32.totalorder %s1084_s14, %s1084_s14 }
  0x1d   :  { %p1091_p0 = por %p1090_p13, %p1089_p12 }
  0x1f   :  { %p1092_p1 = pnand %p1091_p0, %p1085_p11 }
  0x21   :  { %1095 = shalt.err (!%p1092_p1)
}
  0x22   :  { %23 = dma.hbm_to_vmem [thread:$0]  %s1277_s0, 128, %s21_s21, [#allocation3]  }
  0x23   :  { %s1172_s16 = smov [#allocation7]   ;;  %s1096_s20 = scalar_lea.hbm %s1279_s2, 4096 }
  0x24   :  { %s39_s17 = sshll.u32 %s1172_s16, 4  ;;  %p1097_p2 = scmp.ne.s32.totalorder %s1279_s2, %s1096_s20  ;;  %s40_s17 = int_to_ptr.vmem [resolvable:$true] %s39_s17 }
  0x25   :  { %p1100_p3 = scmp.lt.u32.totalorder %s1096_s20, %s1279_s2 }
  0x27   :  { %p1102_p4 = pnand %p1100_p3, %p1097_p2 }
  0x29   :  { %1105 = shalt.err (!%p1102_p4)
}
  0x2a   :  { %s1106_s26 = scalar_lea.vmem %s40_s17, 4096  ;;  %p1111_p6 = scmp.lt.s32.totalorder %s40_s17, %s40_s17 }
  0x2b   :  { %p1107_p5 = scmp.ne.s32.totalorder %s40_s17, %s1106_s26  ;;  %p1112_p7 = scmp.lt.s32.totalorder %s1106_s26, %s1106_s26 }
  0x2d   :  { %p1113_p8 = por %p1112_p7, %p1111_p6 }
  0x2f   :  { %p1114_p9 = pnand %p1113_p8, %p1107_p5 }
  0x31   :  { %1117 = shalt.err (!%p1114_p9)
}
  0x32   :  { %s1173_s0 = smov 64   ;;  %s1174_s21 = smov 4  }
  0x33   :  { %45 = dma.hbm_to_vmem [thread:$0]  %s1279_s2, 4096, %s40_s17, [#allocation6], %s1173_s0, %s1173_s0, %s1174_s21  }
  0x34   :  { %s1175_s29 = smov [#allocation8]   ;;  %s1118_s8 = scalar_lea.hbm %s1280_s3, 4096 }
  0x35   :  { %s51_s30 = sshll.u32 %s1175_s29, 4  ;;  %p1119_p10 = scmp.ne.s32.totalorder %s1280_s3, %s1118_s8  ;;  %s52_s30 = int_to_ptr.vmem [resolvable:$true] %s51_s30 }
  0x36   :  { %p1122_p11 = scmp.lt.u32.totalorder %s1118_s8, %s1280_s3 }
  0x38   :  { %p1124_p12 = pnand %p1122_p11, %p1119_p10 }
  0x3a   :  { %1127 = shalt.err (!%p1124_p12)
}
  0x3b   :  { %s1128_s13 = scalar_lea.vmem %s52_s30, 4096  ;;  %p1133_p0 = scmp.lt.s32.totalorder %s52_s30, %s52_s30 }
  0x3c   :  { %p1129_p13 = scmp.ne.s32.totalorder %s52_s30, %s1128_s13  ;;  %p1134_p1 = scmp.lt.s32.totalorder %s1128_s13, %s1128_s13 }
  0x3e   :  { %p1135_p2 = por %p1134_p1, %p1133_p0 }
  0x40   :  { %p1136_p3 = pnand %p1135_p2, %p1129_p13 }
  0x42   :  { %1139 = shalt.err (!%p1136_p3)
}
  0x43   :  { %57 = dma.hbm_to_vmem [thread:$0]  %s1280_s3, 4096, %s52_s30, [#allocation9], %s1173_s0, %s1173_s0, %s1174_s21  }
  0x44   :  { %1162 = dma.done.wait [#allocation3], 128  }
  0x45   :  { %1163 = vsyncadd [#allocation3], 4294967168 }
  0x46   :  { %1164 = dma.done.wait [#allocation6], 4224  }
  0x47   :  { %1165 = vsyncadd [#allocation6], 4294963072 }
  0x48   :  { %1166 = dma.done.wait [#allocation9], 4096  }
  0x49   :  { %1167 = vsyncadd [#allocation9], 4294963200  ;;  %v986_v0 = vld [vmem:[#allocation8 + $0x40] sm:$0xff]   ;;  %v990_v4 = vld [vmem:[#allocation8 + $0x48] sm:$0xff]   ;;  %v1176_v22 = vmov 1983009808   ;;  %v79_v24 = vlaneseq }
  0x4a   :  { %v987_v1 = vld [vmem:[#allocation8 + $0xc0] sm:$0xff]   ;;  %890 = vmatprep.subr.bf16.mxu0 %v986_v0  ;;  %v991_v5 = vld [vmem:[#allocation8 + $0xc8] sm:$0xff]   ;;  %v994_v8 = vld [vmem:[#allocation8 + $0x50] sm:$0xff]   ;;  %v77_v23 = vunpack.c.l.s4 %v1176_v22  ;;  %s1177_s15 = smov [#allocation10]  }
  0x4b   :  { %v988_v2 = vld [vmem:[#allocation8] sm:$0xff]   ;;  %912 = vmatprep.subr.bf16.mxu1 %v987_v1  ;;  %v992_v6 = vld [vmem:[#allocation8 + $0x8] sm:$0xff]   ;;  %v995_v9 = vld [vmem:[#allocation8 + $0xd0] sm:$0xff]   ;;  %v80_v30 = vshrl.u32 %v79_v24, 7  ;;  %s814_s16 = sshll.u32 %s1177_s15, 4  ;;  %s815_s16 = int_to_ptr.vmem [resolvable:$true] %s814_s16 }
  0x4c   :  { %v989_v3 = vld [vmem:[#allocation8 + $0x80] sm:$0xff]   ;;  %891 = vmatpush3.bf16.msra.mxu0 %v988_v2  ;;  %v993_v7 = vld [vmem:[#allocation8 + $0x88] sm:$0xff]   ;;  %v996_v10 = vld [vmem:[#allocation8 + $0x10] sm:$0xff]   ;;  %v78_v29 = vunpack.c.0.s8 %v77_v23  ;;  %s1140_s17 = scalar_lea.vmem %s815_s16, 32  ;;  %p1145_p5 = scmp.lt.s32.totalorder %s815_s16, %s815_s16 }
  0x4d   :  { %913 = vmatpush3.bf16.msra.mxu1 %v989_v3  ;;  %892 = vmatprep.subr.bf16.mxu0 %v990_v4  ;;  %v997_v11 = vld [vmem:[#allocation8 + $0x90] sm:$0xff]   ;;  %v998_v12 = vld [vmem:[#allocation8 + $0x58] sm:$0xff]   ;;  %v1002_v16 = vld [vmem:[#allocation8 + $0x60] sm:$0xff]   ;;  %p1141_p4 = scmp.ne.s32.totalorder %s815_s16, %s1140_s17  ;;  %p1146_p6 = scmp.lt.s32.totalorder %s1140_s17, %s1140_s17 }
  0x4e   :  { %914 = vmatprep.subr.bf16.mxu1 %v991_v5  ;;  %v999_v13 = vld [vmem:[#allocation8 + $0xd8] sm:$0xff]   ;;  %v1003_v17 = vld [vmem:[#allocation8 + $0xe0] sm:$0xff]   ;;  %v1006_v20 = vld [vmem:[#allocation8 + $0x68] sm:$0xff]   ;;  %v1256_v35 = vsub.s32 %v78_v29, %v80_v30 }
  0x4f   :  { %v1000_v14 = vld [vmem:[#allocation8 + $0x18] sm:$0xff]   ;;  %v1004_v18 = vld [vmem:[#allocation8 + $0x20] sm:$0xff]   ;;  %v1007_v21 = vld [vmem:[#allocation8 + $0xe8] sm:$0xff]   ;;  %p1147_p7 = por %p1146_p6, %p1145_p5 }
  0x50   :  { %893 = vmatpush3.bf16.msra.mxu0 %v992_v6  ;;  %v1001_v15 = vld [vmem:[#allocation8 + $0x98] sm:$0xff]   ;;  %v1005_v19 = vld [vmem:[#allocation8 + $0xa0] sm:$0xff]   ;;  %v1008_v25 = vld [vmem:[#allocation8 + $0x28] sm:$0xff]  }
  0x51   :  { %915 = vmatpush3.bf16.msra.mxu1 %v993_v7  ;;  %894 = vmatprep.subr.bf16.mxu0 %v994_v8  ;;  %v1009_v26 = vld [vmem:[#allocation8 + $0xa8] sm:$0xff]   ;;  %v1010_v27 = vld [vmem:[#allocation8 + $0x70] sm:$0xff]   ;;  %v1014_v33 = vld [vmem:[#allocation8 + $0x78] sm:$0xff]   ;;  %p1148_p8 = pnand %p1147_p7, %p1141_p4 }
  0x52   :  { %916 = vmatprep.subr.bf16.mxu1 %v995_v9  ;;  %v1011_v28 = vld [vmem:[#allocation8 + $0xf0] sm:$0xff]   ;;  %v1015_v34 = vld [vmem:[#allocation8 + $0xf8] sm:$0xff]   ;;  %v1019_v41 = vld [vmem:[#allocation7 + $0x40] sm:$0xff]  }
  0x53   :  { %v1012_v31 = vld [vmem:[#allocation8 + $0x30] sm:$0xff]   ;;  %v1016_v36 = vld [vmem:[#allocation8 + $0x38] sm:$0xff]   ;;  %v1020_v42 = vld [vmem:[#allocation7 + $0xc0] sm:$0xff]  }
  0x54   :  { %895 = vmatpush3.bf16.msra.mxu0 %v996_v10  ;;  %v1013_v32 = vld [vmem:[#allocation8 + $0xb0] sm:$0xff]   ;;  %v1017_v37 = vld [vmem:[#allocation8 + $0xb8] sm:$0xff]   ;;  %v1021_v48 = vld [vmem:[#allocation7] sm:$0xff]  }
  0x55   :  { %917 = vmatpush3.bf16.msra.mxu1 %v997_v11  ;;  %896 = vmatprep.subr.bf16.mxu0 %v998_v12  ;;  %v164_v38 = vld [vmem:[#allocation5] sm:$0xff]  ;;  %v1023_v50 = vld [vmem:[#allocation7 + $0x48] sm:$0xff]   ;;  %v1022_v52 = vld [vmem:[#allocation7 + $0x80] sm:$0xff]  }
  0x56   :  { %918 = vmatprep.subr.bf16.mxu1 %v999_v13  ;;  %v173_v39 = vrot.slane %v164_v38, %v1256_v35  ;;  %v166_v40 = vcombine.high %v164_v38, %v164_v38  ;;  %v1024_v53 = vld [vmem:[#allocation7 + $0xc8] sm:$0xff]   ;;  %v1027_v55 = vld [vmem:[#allocation7 + $0x50] sm:$0xff]   ;;  %v1031_v59 = vld [vmem:[#allocation7 + $0x58] sm:$0xff]  }
  0x57   :  { %v1025_v54 = vld [vmem:[#allocation7 + $0x8] sm:$0xff]   ;;  %v1028_v57 = vld [vmem:[#allocation7 + $0xd0] sm:$0xff]   ;;  %v1032_v61 = vld [vmem:[#allocation7 + $0xd8] sm:$0xff]  }
  0x58   :  { %897 = vmatpush3.bf16.msra.mxu0 %v1000_v14  ;;  %v181_v43 = vcombine.high %v173_v39, %v173_v39  ;;  %v180_v44 = vrot.slane %v166_v40, %v1256_v35  ;;  %v187_v45 = vpack.c.bf16 %v173_v39, %v173_v39  ;;  %v1026_v56 = vld [vmem:[#allocation7 + $0x88] sm:$0xff]   ;;  %v1029_v58 = vld [vmem:[#allocation7 + $0x10] sm:$0xff]   ;;  %v1033_v62 = vld [vmem:[#allocation7 + $0x18] sm:$0xff]  }
  0x59   :  { %919 = vmatpush3.bf16.msra.mxu1 %v1001_v15  ;;  %898 = vmatprep.subr.bf16.mxu0 %v1002_v16  ;;  %v1030_v60 = vld [vmem:[#allocation7 + $0x90] sm:$0xff]   ;;  %v1035_v63 = vld [vmem:[#allocation7 + $0x60] sm:$0xff]   ;;  %v1034_v0 = vld [vmem:[#allocation7 + $0x98] sm:$0xff]  }
  0x5a   :  { %920 = vmatprep.subr.bf16.mxu1 %v1003_v17  ;;  %v188_v46 = vpack.c.bf16 %v181_v43, %v181_v43  ;;  %v182_v47 = vcombine.high %v180_v44, %v180_v44  ;;  %v189_v49 = vpack.c.bf16 %v180_v44, %v180_v44  ;;  %v1036_v1 = vld [vmem:[#allocation7 + $0xe0] sm:$0xff]   ;;  %v1039_v3 = vld [vmem:[#allocation7 + $0x68] sm:$0xff]   ;;  %v1043_v7 = vld [vmem:[#allocation7 + $0x70] sm:$0xff]  }
  0x5b   :  { %v1037_v2 = vld [vmem:[#allocation7 + $0x20] sm:$0xff]   ;;  %v1040_v5 = vld [vmem:[#allocation7 + $0xe8] sm:$0xff]   ;;  %v1044_v9 = vld [vmem:[#allocation7 + $0xf0] sm:$0xff]  }
  0x5c   :  { %899 = vmatpush3.bf16.msra.mxu0 %v1004_v18  ;;  %479 = vmatprep.mubr.bf16.mxu0 %v188_v46  ;;  %v190_v51 = vpack.c.bf16 %v182_v47, %v182_v47  ;;  %v1038_v4 = vld [vmem:[#allocation7 + $0xa0] sm:$0xff]   ;;  %v1041_v6 = vld [vmem:[#allocation7 + $0x28] sm:$0xff]   ;;  %v1045_v10 = vld [vmem:[#allocation7 + $0x30] sm:$0xff]  }
  0x5d   :  { %921 = vmatpush3.bf16.msra.mxu1 %v1005_v19  ;;  %900 = vmatprep.subr.bf16.mxu0 %v1006_v20  ;;  %v1042_v8 = vld [vmem:[#allocation7 + $0xa8] sm:$0xff]   ;;  %v1047_v11 = vld [vmem:[#allocation7 + $0x78] sm:$0xff]   ;;  %v1046_v12 = vld [vmem:[#allocation7 + $0xb0] sm:$0xff]  }
  0x5e   :  { %922 = vmatprep.subr.bf16.mxu1 %v1007_v21  ;;  %519 = vmatprep.mubr.bf16.mxu1 %v190_v51  ;;  %v1048_v13 = vld [vmem:[#allocation7 + $0xf8] sm:$0xff]   ;;  %v73_v14 = vld [vmem:[#allocation2] sm:$0xff] }
  0x5f   :  { %v1049_v15 = vld [vmem:[#allocation7 + $0x38] sm:$0xff]   ;;  %v82_v16 = vrot.slane %v73_v14, %v1256_v35  ;;  %v75_v17 = vcombine.high %v73_v14, %v73_v14 }
  0x60   :  { %901 = vmatpush3.bf16.msra.mxu0 %v1008_v25  ;;  %v1050_v18 = vld [vmem:[#allocation7 + $0xb8] sm:$0xff]  }
  0x61   :  { %923 = vmatpush3.bf16.msra.mxu1 %v1009_v26  ;;  %902 = vmatprep.subr.bf16.mxu0 %v1010_v27  ;;  %v90_v19 = vcombine.high %v82_v16, %v82_v16  ;;  %v89_v20 = vrot.slane %v75_v17, %v1256_v35  ;;  %v96_v21 = vpack.c.bf16 %v82_v16, %v82_v16 }
  0x62   :  { %924 = vmatprep.subr.bf16.mxu1 %v1011_v28 }
  0x63   :  { %v97_v22 = vpack.c.bf16 %v90_v19, %v90_v19  ;;  %v91_v23 = vcombine.high %v89_v20, %v89_v20  ;;  %v98_v24 = vpack.c.bf16 %v89_v20, %v89_v20 }
  0x64   :  { %903 = vmatpush3.bf16.msra.mxu0 %v1012_v31 }
  0x65   :  { %925 = vmatpush3.bf16.msra.mxu1 %v1013_v32  ;;  %904 = vmatprep.subr.bf16.mxu0 %v1014_v33  ;;  %v99_v25 = vpack.c.bf16 %v91_v23, %v91_v23 }
  0x66   :  { %926 = vmatprep.subr.bf16.mxu1 %v1015_v34 }
  0x68   :  { %905 = vmatpush3.bf16.msra.mxu0 %v1016_v36 }
  0x69   :  { %927 = vmatpush3.bf16.msra.mxu1 %v1017_v37  ;;  %934 = vmatprep.subr.bf16.mxu0 %v1019_v41 }
  0x6a   :  { %956 = vmatprep.subr.bf16.mxu1 %v1020_v42 }
  0x6b   :  { %480 = vmatmul.mubr.bf16.vlgmr.msra.gmra.mrb[0].mxu0 %v187_v45 }
  0x6c   :  { %935 = vmatpush3.bf16.msra.mxu0 %v1021_v48  ;;  %520 = vmatmul.mubr.bf16.vlgmr.msra.gmra.mrb[0].mxu1 %v189_v49  ;;  %v889_v48 = vld [vmem:[%s1281_s4] ss:$0 sm:$0xff] }
  0x6d   :  { %936 = vmatprep.subr.bf16.mxu0 %v1023_v50  ;;  %957 = vmatpush3.bf16.msra.mxu1 %v1022_v52 }
  0x6e   :  { %958 = vmatprep.subr.bf16.mxu1 %v1024_v53  ;;  %751 = vmatprep.mubr.bf16.mxu0 %v97_v22 }
  0x6f   :  { %791 = vmatprep.mubr.bf16.mxu1 %v99_v25 }
  0x70   :  { %937 = vmatpush3.bf16.msra.mxu0 %v1025_v54 }
  0x71   :  { %938 = vmatprep.subr.bf16.mxu0 %v1027_v55  ;;  %959 = vmatpush3.bf16.msra.mxu1 %v1026_v56 }
  0x72   :  { %960 = vmatprep.subr.bf16.mxu1 %v1028_v57 }
  0x74   :  { %939 = vmatpush3.bf16.msra.mxu0 %v1029_v58 }
  0x75   :  { %940 = vmatprep.subr.bf16.mxu0 %v1031_v59  ;;  %961 = vmatpush3.bf16.msra.mxu1 %v1030_v60 }
  0x76   :  { %962 = vmatprep.subr.bf16.mxu1 %v1032_v61 }
  0x78   :  { %941 = vmatpush3.bf16.msra.mxu0 %v1033_v62 }
  0x79   :  { %942 = vmatprep.subr.bf16.mxu0 %v1035_v63  ;;  %963 = vmatpush3.bf16.msra.mxu1 %v1034_v0 }
  0x7a   :  { %964 = vmatprep.subr.bf16.mxu1 %v1036_v1 }
  0x7c   :  { %943 = vmatpush3.bf16.msra.mxu0 %v1037_v2 }
  0x7d   :  { %944 = vmatprep.subr.bf16.mxu0 %v1039_v3  ;;  %965 = vmatpush3.bf16.msra.mxu1 %v1038_v4 }
  0x7e   :  { %966 = vmatprep.subr.bf16.mxu1 %v1040_v5 }
  0x80   :  { %945 = vmatpush3.bf16.msra.mxu0 %v1041_v6 }
  0x81   :  { %946 = vmatprep.subr.bf16.mxu0 %v1043_v7  ;;  %967 = vmatpush3.bf16.msra.mxu1 %v1042_v8 }
  0x82   :  { %968 = vmatprep.subr.bf16.mxu1 %v1044_v9 }
  0x84   :  { %947 = vmatpush3.bf16.msra.mxu0 %v1045_v10 }
  0x85   :  { %948 = vmatprep.subr.bf16.mxu0 %v1047_v11  ;;  %969 = vmatpush3.bf16.msra.mxu1 %v1046_v12 }
  0x86   :  { %970 = vmatprep.subr.bf16.mxu1 %v1048_v13 }
  0x88   :  { %949 = vmatpush3.bf16.msra.mxu0 %v1049_v15 }
  0x89   :  { %971 = vmatpush3.bf16.msra.mxu1 %v1050_v18 }
  0x8b   :  { %752 = vmatmul.mubr.bf16.vlgmr.msra.gmra.mrb[4].mxu0 %v96_v21 }
  0x8c   :  { %792 = vmatmul.mubr.bf16.vlgmr.msra.gmra.mrb[4].mxu1 %v98_v24 }
 0x13e   :  { %v906_v26 = vpop.f32.mrb[0].mxu0 }
 0x13f   :  { %v907_v27 = vpop.f32.mrb[1].mxu0  ;;  %v928_v28 = vpop.f32.mrb[0].mxu1 }
 0x140   :  { %v908_v29 = vadd.f32 %v907_v27, %v906_v26  ;;  %v909_v30 = vpop.f32.mrb[2].mxu0  ;;  %v929_v31 = vpop.f32.mrb[1].mxu1 }
 0x141   :  { %v910_v32 = vpop.f32.mrb[3].mxu0  ;;  %v930_v33 = vadd.f32 %v929_v31, %v928_v28  ;;  %v931_v34 = vpop.f32.mrb[2].mxu1 }
 0x142   :  { %v932_v35 = vpop.f32.mrb[3].mxu1 }
 0x143   :  { %v522_v36 = vadd.f32 %v930_v33, %v908_v29 }
 0x15e   :  { %v950_v37 = vpop.f32.mrb[4].mxu0 }
 0x15f   :  { %v951_v38 = vpop.f32.mrb[5].mxu0  ;;  %v972_v39 = vpop.f32.mrb[4].mxu1 }
 0x160   :  { %v952_v40 = vadd.f32 %v951_v38, %v950_v37  ;;  %v953_v41 = vpop.f32.mrb[6].mxu0  ;;  %v973_v42 = vpop.f32.mrb[5].mxu1 }
 0x161   :  { %v954_v43 = vpop.f32.mrb[7].mxu0  ;;  %v974_v45 = vadd.f32 %v973_v42, %v972_v39  ;;  %v975_v46 = vpop.f32.mrb[6].mxu1 }
 0x162   :  { %v754_v44 = vadd.f32 %v952_v40, %v522_v36  ;;  %v976_v47 = vpop.f32.mrb[7].mxu1 }
 0x164   :  { %v794_v49 = vadd.f32 %v974_v45, %v754_v44 }
 0x166   :  { %v806_v50 = vadd.f32 %v889_v48, %v794_v49 }
 0x168   :  { %807 = vst [vmem:[#allocation10] sm:$0x3] %v806_v50 }
 0x169   :  { %1151 = shalt.err (!%p1148_p8)
}
 0x16a   :  { %s1152_s20 = scalar_lea.hbm %s1282_s5, 32 }
 0x16b   :  { %p1153_p9 = scmp.ne.s32.totalorder %s1282_s5, %s1152_s20  ;;  %p1156_p10 = scmp.lt.u32.totalorder %s1152_s20, %s1282_s5 }
 0x16d   :  { %p1158_p11 = pnand %p1156_p10, %p1153_p9 }
 0x16f   :  { %1161 = shalt.err (!%p1158_p11)
}
 0x170   :  { %817 = dma.vmem_to_hbm [thread:$0]  %s815_s16, 32, %s1282_s5, [#allocation4]  }
 0x171   :  { %1168 = dma.done.wait [#allocation4], 32  }
 0x172   :  { %1169 = vsyncadd [#allocation4], 4294967264 }
 0x173   :  { %821 = vsyncpa [#allocation3], 1 }
 0x174   :  { %822 = vsyncpa [#allocation6], 1 }
 0x175   :  { %823 = vsyncpa [#allocation9], 1 }
 0x176   :  { %824 = vsyncpa [#allocation4], 1 }

</bundles_post_ra>
